<compile_context>
chip_gen: v7x
topology: tpu7x:2x2x1
jax: 0.10.0
libtpu: 0.0.40
codegen_flags: <defaults>
</compile_context>

<pallas_src>
import jax
import jax.numpy as jnp
from jax.experimental import pallas as pl
from jax.experimental.pallas import tpu as pltpu


def _round_up(n, m):
    return (n + m - 1) // m * m


def autorec_kernel(x_ref, w1_ref, b1_ref, w2_ref, b2_ref, o_ref, h_ref):
    """One (batch tile i, item tile j) grid step.

    x_ref:  (tb, NI_k_pad)     compute dtype (double-buffered over i)
    w1_ref: (NI_k_pad, H_pad)  compute dtype (single-copy VMEM resident)
    b1_ref: (1, H_pad)         f32           (single-copy VMEM resident)
    w2_ref: (H_pad, tn)        compute dtype (streamed over j, contiguous tile)
    b2_ref: (1, tn)            f32           (streamed over j)
    o_ref:  (tb, tn)           out dtype
    h_ref:  (tb, H_pad)        compute-dtype scratch: encoder output, reused over j
    """
    # Encoder: compute once per batch tile, on the first item tile.
    @pl.when(pl.program_id(1) == 0)
    def _():
        pre = jnp.dot(x_ref[...], w1_ref[...],
                      preferred_element_type=jnp.float32) + b1_ref[...]
        # bias + sigmoid in f32; store once in the matmul compute dtype so the
        # decoder does not re-cast it every item tile.
        h_ref[...] = jax.nn.sigmoid(pre).astype(h_ref.dtype)

    # Decoder for this item tile (f32 accumulation on the MXU).
    y = jnp.dot(h_ref[...], w2_ref[...],
                preferred_element_type=jnp.float32) + b2_ref[...]
    o_ref[...] = y.astype(o_ref.dtype)


def prepare_autorec_params(w1, b1, w2, b2, *, tn=1024, compute_dtype=jnp.bfloat16):
    """Pad / transpose / cast / tile-pack the AutoRec weights ONCE.

    Hoisted out of the forward hot path: for repeated inference, call this once
    and reuse the returned arrays.

    w1: (hidden, num_items), b1: (hidden,)    -- PyTorch Linear(num_items, hidden)
    w2: (num_items, hidden), b2: (num_items,) -- PyTorch Linear(hidden, num_items)

    Returns (w1_t, b1_p, w2_packed, b2_p):
      w1_t:      (ni_k_pad, h_pad)            compute dtype
      b1_p:      (1, h_pad)                   f32
      w2_packed: (ni_n_pad // tn, h_pad, tn)  compute dtype, tile-contiguous
      b2_p:      (1, ni_n_pad)                f32

    Zero padding keeps the math exact: padded x columns / W1^T rows contribute 0
    to the encoder; padded hidden units give sigmoid(0)=0.5 which multiplies
    zeroed W2^T rows; padded output columns are sliced off by the wrapper.
    """
    hidden, num_items = w1.shape
    cd = compute_dtype

    h_pad = _round_up(hidden, 128)                 # lane-dense encoder output
    ni_k_pad = _round_up(num_items, 128)           # encoder K dim (pad to 128 only)
    tn = min(tn, _round_up(num_items, 128))        # item (N) tile, multiple of 128
    ni_n_pad = _round_up(num_items, tn)            # decoder / output N dim

    w1_t = jnp.pad(w1.T.astype(cd),
                   ((0, ni_k_pad - num_items), (0, h_pad - hidden)))
    b1_p = jnp.pad(b1.astype(jnp.float32), (0, h_pad - hidden)).reshape(1, h_pad)

    w2_t = jnp.pad(w2.T.astype(cd),
                   ((0, h_pad - hidden), (0, ni_n_pad - num_items)))
    # Tile-contiguous packing: w2_packed[j] == W2^T[:, j*tn:(j+1)*tn], so every
    # streamed decoder tile is one contiguous HBM chunk (single DMA descriptor).
    w2_packed = w2_t.reshape(h_pad, ni_n_pad // tn, tn).transpose(1, 0, 2)
    b2_p = jnp.pad(b2.astype(jnp.float32),
                   (0, ni_n_pad - num_items)).reshape(1, ni_n_pad)

    return w1_t, b1_p, w2_packed, b2_p


def autorec_forward(x, w1_t, b1_p, w2_packed, b2_p, *,
                    tb=256, out_dtype=jnp.float32, min_batch_tiles=1,
                    vmem_limit_bytes=None):
    """AutoRec forward on pre-packed weights. Returns (B, num_items) out_dtype."""
    B, num_items = x.shape
    ni_k_pad, h_pad = w1_t.shape
    n_item_tiles, _, tn = w2_packed.shape
    ni_n_pad = n_item_tiles * tn
    cd = w1_t.dtype
    cd_size = jnp.dtype(cd).itemsize
    out_size = jnp.dtype(out_dtype).itemsize

    # ---- batch tiling -------------------------------------------------------
    # Pick tb <= requested, multiple of 8, minimizing padding; optionally force
    # >= min_batch_tiles so the "parallel" batch axis can split across both
    # TensorCores on v7x even for small batches.
    b8 = _round_up(B, 8)
    tb = min(tb, b8)
    n_batch_tiles = max(min_batch_tiles, -(-b8 // tb))       # ceil div
    tb = _round_up(-(-b8 // n_batch_tiles), 8)
    b_pad = n_batch_tiles * tb

    x_p = jnp.pad(x.astype(cd), ((0, b_pad - B), (0, ni_k_pad - num_items)))

    # ---- VMEM budget (derived from the actual tile plan) --------------------
    if vmem_limit_bytes is None:
        need = (2 * tb * ni_k_pad * cd_size        # x tile, double buffered
                + ni_k_pad * h_pad * cd_size       # W1^T, single resident copy
                + h_pad * 4                        # b1, single resident copy
                + 2 * h_pad * tn * cd_size         # W2^T tile, double buffered
                + 2 * tn * 4                       # b2 tile, double buffered
                + 2 * tb * tn * out_size           # out tile, double buffered
                + tb * h_pad * cd_size)            # encoder scratch h
        vmem_limit_bytes = min(max(32 * 1024 * 1024, int(need * 1.3) + (4 << 20)),
                               120 * 1024 * 1024)

    # ---- advisory cost estimate for the XLA scheduler -----------------------
    cost = pl.CostEstimate(
        flops=2 * b_pad * ni_k_pad * h_pad + 2 * b_pad * h_pad * ni_n_pad,
        transcendentals=b_pad * h_pad,
        bytes_accessed=(b_pad * ni_k_pad * cd_size                       # x
                        + ni_k_pad * h_pad * cd_size + h_pad * 4         # W1, b1
                        + n_batch_tiles * (h_pad * ni_n_pad * cd_size    # W2 re-streams
                                           + ni_n_pad * 4)               # b2
                        + b_pad * ni_n_pad * out_size),                  # out
    )

    grid = (n_batch_tiles, n_item_tiles)

    out = pl.pallas_call(
        autorec_kernel,
        out_shape=jax.ShapeDtypeStruct((b_pad, ni_n_pad), out_dtype),
        grid_spec=pltpu.PrefetchScalarGridSpec(
            num_scalar_prefetch=0,
            grid=grid,
            in_specs=[
                pl.BlockSpec((tb, ni_k_pad), lambda i, j: (i, 0)),        # x tile
                pl.BlockSpec(memory_space=pltpu.MemorySpace.VMEM),        # W1^T resident, 1 copy
                pl.BlockSpec(memory_space=pltpu.MemorySpace.VMEM),        # b1 resident, 1 copy
                pl.BlockSpec((None, h_pad, tn), lambda i, j: (j, 0, 0)),  # W2^T tile (contiguous)
                pl.BlockSpec((1, tn), lambda i, j: (0, j)),               # b2 tile
            ],
            out_specs=pl.BlockSpec((tb, tn), lambda i, j: (i, j)),
            scratch_shapes=[pltpu.VMEM((tb, h_pad), cd)],                 # encoder h
        ),
        compiler_params=pltpu.CompilerParams(
            dimension_semantics=("parallel", "arbitrary"),
            vmem_limit_bytes=vmem_limit_bytes),
        cost_estimate=cost,
    )(x_p, w1_t, b1_p, w2_packed, b2_p)

    return out[:B, :num_items]


def autorec(x, w1, b1, w2, b2, *, tn=1024, compute_dtype=jnp.bfloat16, **fwd_kwargs):
    """Convenience one-shot wrapper (packs weights then runs the forward).

    For repeated inference, call prepare_autorec_params once and reuse it so
    the weight pad/transpose/cast is not re-paid every call.
    """
    packed = prepare_autorec_params(w1, b1, w2, b2, tn=tn, compute_dtype=compute_dtype)
    return autorec_forward(x, *packed, **fwd_kwargs)


if __name__ == "__main__":
    # Small item-based AutoRec config: one row per user, one column per item.
    batch = 10            # not a multiple of 8   -> exercises batch padding
    num_items = 200       # not a multiple of 128 -> exercises item padding
    hidden_units = 32     # padded to 128 inside prepare_autorec_params

    key = jax.random.PRNGKey(0)
    kx, k1, k2, k3, k4 = jax.random.split(key, 5)

    x = jax.random.uniform(kx, (batch, num_items), dtype=jnp.float32)

    # PyTorch nn.Linear(in, out): weight (out, in), bias (out,), U(-1/sqrt(in), 1/sqrt(in))
    bound1 = 1.0 / jnp.sqrt(num_items)
    w1 = jax.random.uniform(k1, (hidden_units, num_items), jnp.float32, -bound1, bound1)
    b1 = jax.random.uniform(k2, (hidden_units,), jnp.float32, -bound1, bound1)
    bound2 = 1.0 / jnp.sqrt(hidden_units)
    w2 = jax.random.uniform(k3, (num_items, hidden_units), jnp.float32, -bound2, bound2)
    b2 = jax.random.uniform(k4, (num_items,), jnp.float32, -bound2, bound2)

    # Pure-JAX reference of the PyTorch forward.
    ref = jax.nn.sigmoid(x @ w1.T + b1) @ w2.T + b2

    # f32 path with small tiles so both the multi-item-tile (encoder reuse) and
    # multi-batch-tile grid paths are exercised.
    p32 = prepare_autorec_params(w1, b1, w2, b2, tn=128, compute_dtype=jnp.float32)
    out_f32 = jax.block_until_ready(autorec_forward(x, *p32, tb=8))
    assert out_f32.shape == (batch, num_items)
    assert jnp.allclose(out_f32, ref, atol=1e-5, rtol=1e-5), "f32 mismatch vs reference"

    # Default path: bf16 matmul operands (f32 accumulation / bias / sigmoid),
    # large tiles, f32 output. Error comes from operand quantization only.
    out_bf16 = jax.block_until_ready(autorec(x, w1, b1, w2, b2))
    assert out_bf16.shape == (batch, num_items)
    assert jnp.allclose(out_bf16, ref, atol=5e-2, rtol=5e-2), "bf16 mismatch vs reference"

    print("KERNEL_OK")
</pallas_src>

<mosaic_0001>
module attributes {stable_mosaic.version = 11 : i64} {
  func.func @autorec_kernel(%arg0: i32, %arg1: i32, %arg2: memref<8x256xf32, #tpu.memory_space<vmem>>, %arg3: memref<256x128xf32, #tpu.memory_space<vmem>>, %arg4: memref<1x128xf32, #tpu.memory_space<vmem>>, %arg5: memref<1x128x128xf32, #tpu.memory_space<vmem>>, %arg6: memref<1x128xf32, #tpu.memory_space<vmem>>, %arg7: memref<8x128xf32, #tpu.memory_space<vmem>>, %arg8: memref<8x128xf32, #tpu.memory_space<vmem>>) attributes {dimension_semantics = [#tpu.dimension_semantics<parallel>, #tpu.dimension_semantics<arbitrary>], iteration_bounds = array<i64: 2, 2>, scalar_prefetch = 0 : i64, scratch_operands = 1 : i64, tpu.core_type = #tpu.core_type<tc>, window_params = [{transform_indices = @transform_0, window_bounds = array<i64: 8, 256>}, {pipeline_mode = #tpu.pipeline_mode<synchronous>, transform_indices = @transform_1, window_bounds = array<i64: 256, 128>}, {pipeline_mode = #tpu.pipeline_mode<synchronous>, transform_indices = @transform_2, window_bounds = array<i64: 1, 128>}, {transform_indices = @transform_3, window_bounds = array<i64: 1, 128, 128>}, {transform_indices = @transform_4, window_bounds = array<i64: 1, 128>}, {transform_indices = @transform_5, window_bounds = array<i64: 8, 128>}]} {
    %c0_i32 = arith.constant 0 : i32
    %0 = arith.cmpi eq, %arg1, %c0_i32 : i32
    %1 = arith.extui %0 : i1 to i32
    %c0_i32_0 = arith.constant 0 : i32
    %2 = arith.cmpi ne, %1, %c0_i32_0 : i32
    scf.if %2 {
      %c0_9 = arith.constant 0 : index
      %c0_10 = arith.constant 0 : index
      %11 = vector.load %arg2[%c0_9, %c0_10] : memref<8x256xf32, #tpu.memory_space<vmem>>, vector<8x256xf32>
      %c0_11 = arith.constant 0 : index
      %c0_12 = arith.constant 0 : index
      %12 = vector.load %arg3[%c0_11, %c0_12] : memref<256x128xf32, #tpu.memory_space<vmem>>, vector<256x128xf32>
      %cst_13 = arith.constant dense<0.000000e+00> : vector<8x128xf32>
      %13 = tpu.matmul %11, %12, %cst_13 {dimension_numbers = #tpu.dot_dimension_numbers<[1], [0], [0], [1], [0, 0, 1, 1], [], []>} : vector<8x256xf32>, vector<256x128xf32>, vector<8x128xf32> -> vector<8x128xf32>
      %c0_14 = arith.constant 0 : index
      %c0_15 = arith.constant 0 : index
      %14 = vector.load %arg4[%c0_14, %c0_15] : memref<1x128xf32, #tpu.memory_space<vmem>>, vector<1x128xf32>
      %15 = vector.broadcast %14 : vector<1x128xf32> to vector<8x128xf32>
      %16 = arith.addf %13, %15 : vector<8x128xf32>
      %17 = arith.negf %16 : vector<8x128xf32>
      %18 = math.exp %17 : vector<8x128xf32>
      %cst_16 = arith.constant 1.000000e+00 : f32
      %19 = vector.broadcast %cst_16 : f32 to vector<8x128xf32>
      %20 = arith.addf %19, %18 : vector<8x128xf32>
      %21 = arith.divf %19, %20 : vector<8x128xf32>
      %c0_17 = arith.constant 0 : index
      %c0_18 = arith.constant 0 : index
      %22 = vector.load %arg8[%c0_17, %c0_18] : memref<8x128xf32, #tpu.memory_space<vmem>>, vector<8x128xf32>
      tpu.vector_store %arg8[%c0_17, %c0_18], %21 {strides = array<i32>} : memref<8x128xf32, #tpu.memory_space<vmem>>, vector<8x128xf32>,
    } else {
    }
    %c0 = arith.constant 0 : index
    %c0_1 = arith.constant 0 : index
    %3 = vector.load %arg8[%c0, %c0_1] : memref<8x128xf32, #tpu.memory_space<vmem>>, vector<8x128xf32>
    %c0_2 = arith.constant 0 : index
    %c0_3 = arith.constant 0 : index
    %c0_4 = arith.constant 0 : index
    %4 = vector.load %arg5[%c0_2, %c0_3, %c0_4] : memref<1x128x128xf32, #tpu.memory_space<vmem>>, vector<1x128x128xf32>
    %5 = vector.shape_cast %4 : vector<1x128x128xf32> to vector<128x128xf32>
    %cst = arith.constant dense<0.000000e+00> : vector<8x128xf32>
    %6 = tpu.matmul %3, %5, %cst {dimension_numbers = #tpu.dot_dimension_numbers<[1], [0], [0], [1], [0, 0, 1, 1], [], []>} : vector<8x128xf32>, vector<128x128xf32>, vector<8x128xf32> -> vector<8x128xf32>
    %c0_5 = arith.constant 0 : index
    %c0_6 = arith.constant 0 : index
    %7 = vector.load %arg6[%c0_5, %c0_6] : memref<1x128xf32, #tpu.memory_space<vmem>>, vector<1x128xf32>
    %8 = vector.broadcast %7 : vector<1x128xf32> to vector<8x128xf32>
    %9 = arith.addf %6, %8 : vector<8x128xf32>
    %c0_7 = arith.constant 0 : index
    %c0_8 = arith.constant 0 : index
    %10 = vector.load %arg7[%c0_7, %c0_8] : memref<8x128xf32, #tpu.memory_space<vmem>>, vector<8x128xf32>
    tpu.vector_store %arg7[%c0_7, %c0_8], %9 {strides = array<i32>} : memref<8x128xf32, #tpu.memory_space<vmem>>, vector<8x128xf32>,
    return
  }
  func.func @transform_0(%arg0: i32, %arg1: i32) -> (i32, i32) {
    %c0_i32 = arith.constant 0 : i32
    %c0_i32_0 = arith.constant 0 : i32
    return %arg0, %c0_i32 : i32, i32
  }
  func.func @transform_1(%arg0: i32, %arg1: i32) -> (i32, i32) {
    %c0_i32 = arith.constant 0 : i32
    %c0_i32_0 = arith.constant 0 : i32
    %c0_i32_1 = arith.constant 0 : i32
    return %c0_i32, %c0_i32_0 : i32, i32
  }
  func.func @transform_2(%arg0: i32, %arg1: i32) -> (i32, i32) {
    %c0_i32 = arith.constant 0 : i32
    %c0_i32_0 = arith.constant 0 : i32
    %c0_i32_1 = arith.constant 0 : i32
    return %c0_i32, %c0_i32_0 : i32, i32
  }
  func.func @transform_3(%arg0: i32, %arg1: i32) -> (i32, i32, i32) {
    %c0_i32 = arith.constant 0 : i32
    %c0_i32_0 = arith.constant 0 : i32
    %c0_i32_1 = arith.constant 0 : i32
    return %arg1, %c0_i32, %c0_i32_0 : i32, i32, i32
  }
  func.func @transform_4(%arg0: i32, %arg1: i32) -> (i32, i32) {
    %c0_i32 = arith.constant 0 : i32
    %c0_i32_0 = arith.constant 0 : i32
    return %c0_i32, %arg1 : i32, i32
  }
  func.func @transform_5(%arg0: i32, %arg1: i32) -> (i32, i32) {
    %c0_i32 = arith.constant 0 : i32
    return %arg0, %arg1 : i32, i32
  }
}

</mosaic_0001>

<bundles_post_ra>
// kernel: tpu_custom_call.1
= control target key start
LH: loop header
LB: loop body
LE: loop exit
PB: predicated region body
PF: predicated region fallthrough
CT: control target
= control target key end

     0   :  { %s1712_s0 = inlined_call_operand.hbm [shape: f32[16,256], index: 0, kind: input, shape index: {}]   ;;  %s1713_s1 = inlined_call_operand.hbm [shape: f32[256,128], index: 1, kind: input, shape index: {}]   ;;  %s1714_s2 = inlined_call_operand.vmem [shape: f32[1,128], index: 2, kind: input, shape index: {}]   ;;  %s1715_s3 = inlined_call_operand.hbm [shape: f32[2,128,128], index: 3, kind: input, shape index: {}]   ;;  %s1716_s4 = inlined_call_operand.vmem [shape: f32[1,256], index: 4, kind: input, shape index: {}]   ;;  %s1717_s5 = inlined_call_operand.hbm [shape: f32[16,256], index: 5, kind: output, shape index: {}]  }
   0x1   :  { %1733 = sst [smem:[#allocation26_spill]] %s1712_s0 }
   0x2   :  { %1734 = sst [smem:[#allocation27_spill]] %s1714_s2 }
   0x3   :  { %1735 = sst [smem:[#allocation28_spill]] %s1716_s4 }
   0x4   :  { %1736 = sst [smem:[#allocation29_spill]] %s1717_s5 }
   0x5   :  { %10 = vsyncpa [#allocation4], 0 }
   0x6   :  { %12 = vsyncpa [#allocation4 + $0x1], 0 }
   0x7   :  { %13 = vsyncpa [#allocation7], 0 }
   0x8   :  { %14 = vsyncpa [#allocation5], 0 }
   0x9   :  { %16 = vsyncpa [#allocation5 + $0x1], 0  ;;  %s1280_s18 = smov 0   ;;  %s1282_s19 = smov 0  }
   0xa   :  { %s1284_s20 = smov 0   ;;  %s1286_s21 = smov 0  }
   0xb   :  { %s1288_s22 = smov 0   ;;  %s1290_s23 = smov 0  }
   0xc   :  { %s1292_s24 = smov 0   ;;  %s1294_s25 = smov 0  }
   0xd   :  { %s1296_s26 = smov 0   ;;  %s1298_s27 = smov 0  }
   0xe   :  { %s1300_s28 = smov 0   ;;  %s1302_s29 = smov 0  }
   0xf   :  { %s1304_s30 = smov 0   ;;  %s1306_s6 = smov 0  }
  0x10 LB: > { %1737 = sst [smem:[#allocation14_spill]] %s1195_s20  ;;  %s31_s7 = sadd.s32 1, %s1231_s29  ;;  %s1239_s6 = sphi %s1306_s6, %s22_s6   ;;  %s1235_s30 = sphi %s1304_s30, %s1787_s30   ;;  %s1231_s29 = sphi %s1302_s29, %s1795_s29   ;;  %s1227_s28 = sphi %s1300_s28, %s1785_s28   ;;  %s1223_s27 = sphi %s1298_s27, %s1784_s27   ;;  %s1219_s26 = sphi %s1296_s26, %s1783_s26   ;;  %s1215_s25 = sphi %s1294_s25, %s1794_s25   ;;  %s1211_s24 = sphi %s1292_s24, %s1793_s24   ;;  %s1207_s23 = sphi %s1290_s23, %s1781_s23   ;;  %s1203_s22 = sphi %s1288_s22, %s1792_s22   ;;  %s1199_s21 = sphi %s1286_s21, %s1791_s21   ;;  %s1195_s20 = sphi %s1284_s20, %s1779_s20   ;;  %s1191_s19 = sphi %s1282_s19, %s1790_s19   ;;  %s1187_s18 = sphi %s1280_s18, %s1789_s18  }
  0x11   : > { %1738 = sst [smem:[#allocation15_spill]] %s1207_s23  ;;  %s34_s8 = sadd.s32 1, %s1235_s30 }
  0x12   : > { %1739 = sst [smem:[#allocation16_spill]] %s1219_s26  ;;  %p32_p0 = scmp.ge.s32.totalorder %s31_s7, 2 }
  0x13   : > { %1740 = sst [smem:[#allocation17_spill]] %s1223_s27  ;;  %s41_s9 = sadd.s32 1, %s1219_s26 }
  0x14   : > { %1741 = sst [smem:[#allocation18_spill]] %s1227_s28  ;;  %p48_p1 = scmp.ne.s32.totalorder %s1219_s26, %s1215_s25 }
  0x15   : > { %1742 = sst [smem:[#allocation19_spill]] %s1231_s29  ;;  %p49_p2 = scmp.eq.s32.totalorder %s1239_s6, 0 }
  0x16   : > { %1743 = sst [smem:[#allocation20_spill]] %s1235_s30  ;;  %s1797_s7 = smov (%p32_p0, %s31_s7), 0 }
  0x17   : > { %1744 = sst [smem:[#allocation21_spill]] %s1797_s7  ;;  %s1799_s8 = smov (!%p32_p0, %s34_s8), %s1235_s30 }
  0x18   : > { %p1361_p3 = por %p49_p2, %p48_p1  ;;  %p36_p5 = scmp.ge.s32.totalorder %s1799_s8, 2 }
  0x19   : > { %s106_s11 = ssub.s32 %s1231_s29, %s1797_s7  ;;  %s109_s12 = sadd.s32 1, %s1207_s23 }
  0x1a   : > { %p107_p6 = scmp.eq.s32.totalorder %s106_s11, 0  ;;  %s1801_s8 = smov (%p36_p5, %s1799_s8), 0 }
  0x1b   : > { %1746 = sst [smem:[#allocation22_spill]] %s1801_s8  ;;  %s38_s14 = ssub.s32 %s1235_s30, %s1801_s8 }
  0x1c   : > { %s1373_s13 = scalar_select %p107_p6, %s1207_s23, %s109_s12  }
  0x1d   : > { %p116_p7 = scmp.ne.s32.totalorder %s1207_s23, %s1203_s22  ;;  %p39_p8 = scmp.eq.s32.totalorder %s38_s14, 0 }
  0x1e   : > { %1747 = sst [smem:[#allocation23_spill]] %s1373_s13  ;;  %s160_s16 = sor.u32 %s106_s11, %s38_s14 }
  0x1f   : > { %p1383_p10 = por %p116_p7, %p49_p2  ;;  %p161_p11 = scmp.eq.s32.totalorder %s160_s16, 0 }
  0x20   : > { %s1388_s17 = scalar_select %p39_p8, %s1219_s26, %s41_s9  }
  0x21   : > { %s163_s7 = sadd.s32 1, %s1195_s20  ;;  %p872_p12 = scmp.lt.s32.totalorder %s1239_s6, 4 }
  0x22   : > { %1749 = sst [smem:[#allocation24_spill]] %s1388_s17  ;;  %s216_s12 = sand.u32 1, %s1239_s6  }
  0x23   : > { %s1393_s5 = scalar_select %p161_p11, %s1195_s20, %s163_s7  }
  0x24   : > { %s218_s8 = sand.u32 1, %s1219_s26   ;;  %s701_s28 = sshll.u32 %s1235_s30, 8 }
  0x25   : > { %1750 = sst [smem:[#allocation25_spill]] %s1393_s5  ;;  %s681_s13 = sshll.u32 %s218_s8, 4 }
  0x26   : > { %s1751_s0 = sld [smem:[#allocation26_spill]]  ;;  %s220_s9 = scalar_lea.vmem [#allocation3], %s681_s13 }
  0x27   : > { %s228_s11 = sshll.u32 %s220_s9, 4  ;;  %p1407_p13 = pnand %p872_p12, %p1361_p3  ;;  %s1403_s11 = int_to_ptr.vmem [resolvable:$true] %s228_s11 }
  0x28   : > { %p1413_p0 = pnand %p872_p12, %p1383_p10  ;;  %s1417_s4 = scalar_lea.sflag [#allocation4], %s216_s12 }
  0x29   : > { %p999_p2 = pneg %p1407_p13 }
  0x2a   : > { %s1753_s2 = scalar_select %p1413_p0, 1, 0 }
  0x2c   : > { %s1401_s27 = scalar_lea.hbm %s1751_s0, %s701_s28  ;;  %s1002_s13 = scalar_lea.hbm %s1751_s0, 512 }
  0x2d   : > { %s997_s28 = scalar_lea.hbm %s1401_s27, 256  ;;  %p1003_p6 = scmp.lt.u32.totalorder %s1401_s27, %s1751_s0 }
  0x2e   : > { %p998_p1 = scmp.ne.s32.totalorder %s1401_s27, %s997_s28  ;;  %p1004_p7 = scmp.lt.u32.totalorder %s1002_s13, %s997_s28 }
  0x2f   : > { %p1006_p10 = scmp.lt.u32.totalorder %s997_s28, %s1401_s27 }
  0x30   : > { %p1000_p5 = pnand %p999_p2, %p998_p1  ;;  %p1005_p8 = por %p1004_p7, %p1003_p6 }
  0x32   : > { %p1001_p3 = pneg %p1000_p5  ;;  %p1007_p11 = por %p1006_p10, %p1005_p8 }
  0x34   : > { %p1008_p12 = pnand %p1007_p11, %p1001_p3 }
  0x36   : > { %1011 = shalt.err (!%p1008_p12)
}
  0x37   : > { %s1012_s16 = scalar_lea.vmem %s1403_s11, 256  ;;  %s1241_s12 = smov [#allocation3]  }
  0x38   : > { %p1013_p1 = scmp.ne.s32.totalorder %s1403_s11, %s1012_s16  ;;  %s1017_s9 = sshll.u32 %s1241_s12, 4  ;;  %s1018_s9 = int_to_ptr.vmem [resolvable:$false] %s1017_s9 }
  0x39   : > { %s1019_s8 = scalar_lea.vmem %s1018_s9, 512  ;;  %p1020_p4 = scmp.lt.s32.totalorder %s1403_s11, %s1018_s9 }
  0x3a   : > { %p1015_p5 = pnand %p1013_p1, %p999_p2  ;;  %p1021_p6 = scmp.lt.s32.totalorder %s1019_s8, %s1012_s16 }
  0x3c   : > { %p1016_p9 = pneg %p1015_p5  ;;  %p1022_p7 = por %p1021_p6, %p1020_p4 }
  0x3e   : > { %p1023_p8 = pnand %p1022_p7, %p1016_p9 }
  0x40   : > { %1026 = shalt.err (!%p1023_p8)
}
  0x41   : > { %863 = dma.hbm_to_vmem [thread:$0]  (!%p1407_p13), %s1401_s27, 256, %s1403_s11, %s1417_s4  }
  0x42   : > { %s1446_s28 = sadd.s32 4294967295, %s1239_s6   ;;  %s677_s7 = sadd.s32 4294967294, %s1239_s6  }
  0x43   : > { %p1727_p4 = scmp.eq.s32.totalorder %s1446_s28, 0  ;;  %p173_p9 = scmp.ne.s32.totalorder %s1195_s20, %s1191_s19 }
  0x44   : > { %p174_p2 = scmp.eq.s32.totalorder %s1446_s28, 3  ;;  %p1754_p3 = scmp.ne.s32.totalorder %s1215_s25, %s1211_s24 }
  0x45   : > { %p1756_p13 = scmp.ne.s32.totalorder %s1203_s22, %s1199_s21  ;;  %p179_p1 = scmp.ne.s32.totalorder %s1191_s19, %s1187_s18 }
  0x46   : > { %p1458_p10 = por %p1727_p4, %p1754_p3  ;;  %p1471_p12 = por %p174_p2, %p173_p9 }
  0x47   : > { %p1467_p11 = por %p1756_p13, %p1727_p4  ;;  %p180_p5 = scmp.eq.s32.totalorder %s677_s7, 3 }
  0x48   : > { %s1755_s10 = scalar_select %p1458_p10, 1, 0 }
  0x49   : > { %s1757_s27 = scalar_select %p1467_p11, 1, 0 }
  0x4a   : > { %s1758_s11 = scalar_select %p1471_p12, 1, 0 }
  0x4b   : > { %p678_p6 = scmp.ge.s32.totalorder %s1239_s6, 1  ;;  %p187_p7 = scmp.lt.s32.totalorder %s1239_s6, 5 }
  0x4c   : > { %p1479_p8 = por %p180_p5, %p179_p1  ;;  %s1242_s21 = smov [#allocation6]  }
  0x4d   : > { %p1483_p3 = pnand %p678_p6, %p187_p7  ;;  %s199_s14 = sshll.u32 %s1242_s21, 4  ;;  %s1487_s14 = int_to_ptr.vmem [resolvable:$true] %s199_s14 }
  0x4e   : > { %s1759_s24 = scalar_select %p1479_p8, 1, 0 }
  0x4f   : > { %s1760_s13 = scalar_select %p1483_p3, 1, 0 }
  0x50   : > { %p856_p9 = pneg %p1483_p3  ;;  %s237_s15 = sand.u32 1, %s1207_s23  }
  0x51   : > { %s702_s16 = sshll.u32 %s1231_s29, 11  ;;  %s684_s9 = sshll.u32 %s237_s15, 7 }
  0x52   : > { %p1495_p2 = pnand %p856_p9, %p1727_p4  ;;  %s1502_s0 = scalar_lea.hbm %s1715_s3, %s702_s16 }
  0x53   : > { %s239_s30 = scalar_lea.vmem [#allocation8], %s684_s9  ;;  %s1027_s5 = scalar_lea.hbm %s1713_s1, 4096 }
  0x54   : > { %s246_s21 = sshll.u32 %s239_s30, 4  ;;  %p1028_p13 = scmp.ne.s32.totalorder %s1713_s1, %s1027_s5  ;;  %s1528_s21 = int_to_ptr.vmem [resolvable:$true] %s246_s21 }
  0x55   : > { %p1029_p1 = pneg %p1495_p2  ;;  %p1034_p7 = scmp.lt.u32.totalorder %s1027_s5, %s1713_s1 }
  0x57   : > { %p1030_p5 = pnand %p1029_p1, %p1028_p13 }
  0x59   : > { %p1031_p6 = pneg %p1030_p5 }
  0x5b   : > { %p1036_p9 = pnand %p1034_p7, %p1031_p6 }
  0x5d   : > { %1039 = shalt.err (!%p1036_p9)
}
  0x5e   : > { %s1040_s30 = scalar_lea.vmem %s1487_s14, 4096  ;;  %p1048_p11 = scmp.lt.s32.totalorder %s1487_s14, %s1487_s14 }
  0x5f   : > { %p1041_p4 = scmp.ne.s32.totalorder %s1487_s14, %s1040_s30  ;;  %p1049_p10 = scmp.lt.s32.totalorder %s1040_s30, %s1040_s30 }
  0x61   : > { %p1043_p8 = pnand %p1041_p4, %p1029_p1  ;;  %p1050_p3 = por %p1049_p10, %p1048_p11 }
  0x63   : > { %p1044_p12 = pneg %p1043_p8 }
  0x65   : > { %p1051_p0 = pnand %p1050_p3, %p1044_p12 }
  0x67   : > { %1054 = shalt.err (!%p1051_p0)
}
  0x68   : > { %s1243_s23 = smov 128   ;;  %s1244_s5 = smov 8  }
  0x69   : > { %859 = dma.hbm_to_vmem [thread:$0]  (!%p1495_p2), %s1713_s1, 4096, %s1487_s14, [#allocation7], %s1243_s23, %s1243_s23, %s1244_s5  }
  0x6a   : > { %s1055_s29 = scalar_lea.hbm %s1502_s0, 2048  ;;  %p1762_p4 = scmp.ne.s32.totalorder %s1753_s2, 0 }
  0x6b   : > { %p1056_p0 = scmp.ne.s32.totalorder %s1502_s0, %s1055_s29  ;;  %s1060_s12 = scalar_lea.hbm %s1715_s3, 4096 }
  0x6c   : > { %p1057_p10 = pneg %p1762_p4  ;;  %p1061_p8 = scmp.lt.u32.totalorder %s1502_s0, %s1715_s3 }
  0x6d   : > { %p1062_p3 = scmp.lt.u32.totalorder %s1060_s12, %s1055_s29  ;;  %p1064_p13 = scmp.lt.u32.totalorder %s1055_s29, %s1502_s0 }
  0x6e   : > { %p1058_p11 = pnand %p1057_p10, %p1056_p0 }
  0x6f   : > { %p1063_p2 = por %p1062_p3, %p1061_p8 }
  0x70   : > { %p1059_p12 = pneg %p1058_p11 }
  0x71   : > { %p1065_p1 = por %p1064_p13, %p1063_p2 }
  0x73   : > { %p1066_p5 = pnand %p1065_p1, %p1059_p12 }
  0x75   : > { %1069 = shalt.err (!%p1066_p5)
}
  0x76   : > { %s1070_s14 = scalar_lea.vmem %s1528_s21, 2048  ;;  %s1245_s7 = smov [#allocation8]  }
  0x77   : > { %p1071_p6 = scmp.ne.s32.totalorder %s1528_s21, %s1070_s14  ;;  %s1075_s15 = sshll.u32 %s1245_s7, 4  ;;  %s1076_s15 = int_to_ptr.vmem [resolvable:$false] %s1075_s15 }
  0x78   : > { %s1077_s30 = scalar_lea.vmem %s1076_s15, 4096  ;;  %p1078_p0 = scmp.lt.s32.totalorder %s1528_s21, %s1076_s15 }
  0x79   : > { %p1073_p7 = pnand %p1071_p6, %p1057_p10  ;;  %p1079_p11 = scmp.lt.s32.totalorder %s1077_s30, %s1070_s14 }
  0x7b   : > { %p1074_p9 = pneg %p1073_p7  ;;  %p1080_p8 = por %p1079_p11, %p1078_p0 }
  0x7d   : > { %p1081_p3 = pnand %p1080_p8, %p1074_p9 }
  0x7f   : > { %1084 = shalt.err (!%p1081_p3)
}
  0x80   : > { %866 = dma.hbm_to_vmem [thread:$0]  (!%p1762_p4), %s1502_s0, 2048, %s1528_s21, %s1417_s4, %s1243_s23, %s1243_s23, %s1244_s5  }
  0x81   : > { %p1763_p10 = scmp.ne.s32.totalorder %s1760_s13, 0 }
  0x82   : > { %s266_s20 = sand.u32 (!%p1763_p10), 1, %s1446_s28   ;;  %s268_s26 = sand.u32 (!%p1763_p10), 1, %s1215_s25  }
  0x83   : > { %264 = sbr.rel (%p1763_p10) target bundleno = 695 (0x2b7), region = 40  ;;  %s1563_s29 = sshll.u32 (!%p1763_p10), %s268_s26, 4 }
  0x84   : > { %s267_s17 = scalar_lea.sflag (!%p1763_p10), [#allocation4], %s266_s20  ;;  %s270_s2 = scalar_lea.vmem (!%p1763_p10), [#allocation3], %s1563_s29 }
  0x85   : > { %p1764_p12 = scmp.ne.s32.totalorder (!%p1763_p10), %s1755_s10, 0 }
  0x8a   : > { %1170 = dma.done.wait (%p1764_p12), %s267_s17, 256  }
  0x8b   : > { %1172 = vsyncadd (%p1764_p12), %s267_s17, 4294967040  ;;  %p1765_p4 = scmp.eq.s32.totalorder %s1446_s28, 0 }
  0x8d   : > { %1174 = dma.done.wait (%p1765_p4), [#allocation7], 4096   ;;  %p1766_p2 = pmov %p1765_p4 }
  0x8e   : > { %s281_s0 = sand.u32 1, %s1203_s22   ;;  %p1767_p13 = scmp.ne.s32.totalorder %s1757_s27, 0 }
  0x8f   : > { %1176 = vsyncadd (%p1766_p2), [#allocation7], 4294963200  ;;  %s690_s4 = sshll.u32 %s281_s0, 7 }
  0x90   : > { %s1575_s13 = scalar_lea.vmem [#allocation8], %s690_s4 }
  0x91   : > { %1178 = dma.done.wait (%p1767_p13), %s267_s17, 2048  }
  0x92   : > { %1180 = vsyncadd (%p1767_p13), %s267_s17, 4294965248  ;;  %s1768_s10 = sld [smem:[#allocation17_spill]]  ;;  %s315_s21 = sand.u32 1, %s1191_s19  }
  0x93   : > { %s1585_s28 = sshll.u32 %s315_s21, 3  ;;  %s1769_s12 = sld [smem:[#allocation28_spill]] }
  0x94   : > { %s317_s8 = scalar_lea.vmem [#allocation9], %s1585_s28 }
  0x98   : > { %p318_p1 = scmp.lt.s32.totalorder %s1768_s10, 1  ;;  %p692_p5 = scmp.ne.s32.totalorder %s1768_s10, 0 }
  0x99   : > { %v343_v0 = vld [vmem:[#allocation6 + $0x80] sm:$0xff] (!%p692_p5)  ;;  %v344_v1 = vld [vmem:[#allocation6 + $0x88] sm:$0xff] (!%p692_p5)  ;;  %v345_v5 = vld [vmem:[#allocation6 + $0x90] sm:$0xff] (!%p692_p5)  ;;  %s1770_s7 = sld [smem:[#allocation27_spill]] (!%p692_p5) }
  0x9a   : > { %s1588_s23 = scalar_select %p318_p1, %s1768_s10, 1 }
  0x9b   : > { %324 = sbr.rel (%p692_p5) target bundleno = 433 (0x1b1), region = 56  ;;  %v327_v2 = vld [vmem:[#allocation6] sm:$0xff] (!%p692_p5)  ;;  %v790_v3 = vpack.c.bf16 (!%p692_p5), %v344_v1, %v343_v0  ;;  %v328_v4 = vld [vmem:[#allocation6 + $0x8] sm:$0xff] (!%p692_p5)  ;;  %v346_v6 = vld [vmem:[#allocation6 + $0x98] sm:$0xff] (!%p692_p5) }
  0x9c   : > { %s320_s9 = scalar_lea.vmem %s1769_s12, %s1588_s23  ;;  %v792_v7 = vpack.c.bf16 (!%p692_p5), %v328_v4, %v327_v2  ;;  %v794_v8 = vpack.c.bf16 (!%p692_p5), %v346_v6, %v345_v5  ;;  %v329_v9 = vld [vmem:[#allocation6 + $0x10] sm:$0xff] (!%p692_p5)  ;;  %v330_v10 = vld [vmem:[#allocation6 + $0x18] sm:$0xff] (!%p692_p5)  ;;  %v347_v11 = vld [vmem:[#allocation6 + $0xa0] sm:$0xff] (!%p692_p5) }
  0x9d   : > { %791 = vmatprep.subr.bf16.mxu0 (!%p692_p5), %v790_v3  ;;  %v348_v12 = vld [vmem:[#allocation6 + $0xa8] sm:$0xff] (!%p692_p5)  ;;  %v796_v13 = vpack.c.bf16 (!%p692_p5), %v330_v10, %v329_v9  ;;  %v331_v15 = vld [vmem:[#allocation6 + $0x20] sm:$0xff] (!%p692_p5)  ;;  %v349_v17 = vld [vmem:[#allocation6 + $0xb0] sm:$0xff] (!%p692_p5) }
  0x9e   : > { %793 = vmatpush3.bf16.msra.mxu0 (!%p692_p5), %v792_v7  ;;  %v798_v14 = vpack.c.bf16 (!%p692_p5), %v348_v12, %v347_v11  ;;  %v332_v16 = vld [vmem:[#allocation6 + $0x28] sm:$0xff] (!%p692_p5)  ;;  %v350_v18 = vld [vmem:[#allocation6 + $0xb8] sm:$0xff] (!%p692_p5)  ;;  %v333_v21 = vld [vmem:[#allocation6 + $0x30] sm:$0xff] (!%p692_p5) }
  0x9f   : > { %795 = vmatprep.subr.bf16.mxu0 (!%p692_p5), %v794_v8  ;;  %v800_v19 = vpack.c.bf16 (!%p692_p5), %v332_v16, %v331_v15  ;;  %v802_v20 = vpack.c.bf16 (!%p692_p5), %v350_v18, %v349_v17  ;;  %v334_v22 = vld [vmem:[#allocation6 + $0x38] sm:$0xff] (!%p692_p5)  ;;  %v351_v23 = vld [vmem:[#allocation6 + $0xc0] sm:$0xff] (!%p692_p5)  ;;  %v352_v24 = vld [vmem:[#allocation6 + $0xc8] sm:$0xff] (!%p692_p5) }
  0xa0   : > { %v326_v25 = vld [vmem:[%s270_s2 + $0x8] sm:$0xff] (!%p692_p5)  ;;  %v804_v26 = vpack.c.bf16 (!%p692_p5), %v334_v22, %v333_v21  ;;  %v806_v27 = vpack.c.bf16 (!%p692_p5), %v352_v24, %v351_v23  ;;  %v335_v28 = vld [vmem:[#allocation6 + $0x40] sm:$0xff] (!%p692_p5)  ;;  %v353_v30 = vld [vmem:[#allocation6 + $0xd0] sm:$0xff] (!%p692_p5) }
  0xa1   : > { %430 = vmatprep.mubr.f32.mxu0 (!%p692_p5), %v326_v25  ;;  %v336_v29 = vld [vmem:[#allocation6 + $0x48] sm:$0xff] (!%p692_p5)  ;;  %v354_v31 = vld [vmem:[#allocation6 + $0xd8] sm:$0xff] (!%p692_p5)  ;;  %v337_v34 = vld [vmem:[#allocation6 + $0x50] sm:$0xff] (!%p692_p5) }
  0xa2   : > { %797 = vmatpush3.bf16.msra.mxu0 %v796_v13  ;;  %v808_v32 = vpack.c.bf16 %v336_v29, %v335_v28  ;;  %v810_v33 = vpack.c.bf16 %v354_v31, %v353_v30  ;;  %v338_v35 = vld [vmem:[#allocation6 + $0x58] sm:$0xff]  ;;  %v355_v36 = vld [vmem:[#allocation6 + $0xe0] sm:$0xff]  ;;  %v356_v37 = vld [vmem:[#allocation6 + $0xe8] sm:$0xff] }
  0xa3   : > { %799 = vmatprep.subr.bf16.mxu0 %v798_v14  ;;  %v812_v38 = vpack.c.bf16 %v338_v35, %v337_v34  ;;  %v814_v39 = vpack.c.bf16 %v356_v37, %v355_v36  ;;  %v339_v40 = vld [vmem:[#allocation6 + $0x60] sm:$0xff]  ;;  %v340_v41 = vld [vmem:[#allocation6 + $0x68] sm:$0xff]  ;;  %v357_v42 = vld [vmem:[#allocation6 + $0xf0] sm:$0xff] }
  0xa4   : > { %v358_v43 = vld [vmem:[#allocation6 + $0xf8] sm:$0xff]  ;;  %v816_v44 = vpack.c.bf16 %v340_v41, %v339_v40  ;;  %v341_v46 = vld [vmem:[#allocation6 + $0x70] sm:$0xff] }
  0xa5   : > { %v818_v45 = vpack.c.bf16 %v358_v43, %v357_v42  ;;  %v342_v47 = vld [vmem:[#allocation6 + $0x78] sm:$0xff]  ;;  %v325_v49 = vld [vmem:[%s270_s2] sm:$0xff] }
  0xa6   : > { %801 = vmatpush3.bf16.msra.mxu0 %v800_v19  ;;  %v820_v48 = vpack.c.bf16 %v342_v47, %v341_v46  ;;  %v693_v51 = vld [vmem:[%s1770_s7] ss:$0 sm:$0xff] }
  0xa7   : > { %803 = vmatprep.subr.bf16.mxu0 %v802_v20 }
  0xaa   : > { %805 = vmatpush3.bf16.msra.mxu0 %v804_v26 }
  0xab   : > { %807 = vmatprep.subr.bf16.mxu0 %v806_v27 }
  0xae   : > { %809 = vmatpush3.bf16.msra.mxu0 %v808_v32 }
  0xaf   : > { %811 = vmatprep.subr.bf16.mxu0 %v810_v33 }
  0xb2   : > { %813 = vmatpush3.bf16.msra.mxu0 %v812_v38 }
  0xb3   : > { %815 = vmatprep.subr.bf16.mxu0 %v814_v39 }
  0xb6   : > { %817 = vmatpush3.bf16.msra.mxu0 %v816_v44 }
  0xb7   : > { %819 = vmatprep.subr.bf16.mxu0 %v818_v45 }
  0xba   : > { %821 = vmatpush3.bf16.msra.mxu0 %v820_v48 }
  0xbd   : > { %431 = vmatmul.mubr.f32.vlgmr.msra.gmra.mrb[0].mxu0 %v325_v49 }
 0x190   : > { %v735_v50 = vpop.f32.mrb[0].mxu0 }
 0x191   : > { %v736_v52 = vpop.f32.mrb[1].mxu0 }
 0x192   : > { %v737_v53 = vadd.f32 %v736_v52, %v735_v50 }
 0x194   : > { %v433_v54 = vadd.f32 %v737_v53, %v693_v51 }
 0x196   : > { %v694_v55 = vmul.f32 -1.442695, %v433_v54 }
 0x198   : > { %993 = vpow2.f32 %v694_v55 }
 0x1a2   : > { %v994_v56 = vpop.eup %993 }
 0x1a3   : > { %v439_v57 = vadd.f32 1.0, %v994_v56 }
 0x1a5   : > { %995 = vrcp.f32 %v439_v57 }
 0x1af   : > { %v996_v58 = vpop.eup %995 }
 0x1b0   : > { %442 = vst [vmem:[#allocation2] sm:$0xff] %v996_v58 }
 0x1b1 PF: > { %v444_v59 = vld [vmem:[%s1575_s13] sm:$0xff]  ;;  %v445_v60 = vld [vmem:[%s1575_s13 + $0x8] sm:$0xff]  ;;  %v446_v61 = vld [vmem:[%s1575_s13 + $0x10] sm:$0xff]  ;;  %v1246_v62 = vmov 0.0|0.0   ;;  %vm1247_vm0 = vmmov 0   ;;  %v1248_v1 = vmov 0.0  }
 0x1b2   : > { %822 = vmatprep.subr.bf16.mxu0 %v1246_v62  ;;  %v823_v63 = vpack.c.bf16 %v445_v60, %v444_v59  ;;  %v447_v0 = vld [vmem:[%s1575_s13 + $0x18] sm:$0xff]  ;;  %787 = vmatprep.mubr.msk.f32.mxu0 %vm1247_vm0, %v1248_v1  ;;  %v448_v3 = vld [vmem:[%s1575_s13 + $0x20] sm:$0xff]  ;;  %v449_v4 = vld [vmem:[%s1575_s13 + $0x28] sm:$0xff]  ;;  %s1771_s15 = sld [smem:[#allocation18_spill]]  ;;  %s1772_s30 = sld [smem:[#allocation17_spill]] }
 0x1b3   : > { %v826_v2 = vpack.c.bf16 %v447_v0, %v446_v61  ;;  %v829_v5 = vpack.c.bf16 %v449_v4, %v448_v3  ;;  %v450_v6 = vld [vmem:[%s1575_s13 + $0x30] sm:$0xff]  ;;  %v451_v7 = vld [vmem:[%s1575_s13 + $0x38] sm:$0xff]  ;;  %v452_v9 = vld [vmem:[%s1575_s13 + $0x40] sm:$0xff]  ;;  %s554_s4 = sshll.u32 %s317_s8, 4  ;;  %s1774_s5 = sld [smem:[#allocation29_spill]]  ;;  %s1633_s4 = int_to_ptr.vmem [resolvable:$true] %s554_s4 }
 0x1b4   : > { %824 = vmatpush3.bf16.msra.mxu0 %v823_v63  ;;  %v832_v8 = vpack.c.bf16 %v451_v7, %v450_v6  ;;  %v453_v10 = vld [vmem:[%s1575_s13 + $0x48] sm:$0xff]  ;;  %v454_v12 = vld [vmem:[%s1575_s13 + $0x50] sm:$0xff]  ;;  %v455_v13 = vld [vmem:[%s1575_s13 + $0x58] sm:$0xff]  ;;  %s539_s23 = scalar_lea.sflag [#allocation5], %s315_s21  ;;  %s1085_s12 = scalar_lea.vmem %s1633_s4, 128 }
 0x1b5   : > { %825 = vmatprep.subr.bf16.mxu0 %v1246_v62  ;;  %v835_v11 = vpack.c.bf16 %v453_v10, %v452_v9  ;;  %v838_v14 = vpack.c.bf16 %v455_v13, %v454_v12  ;;  %v456_v15 = vld [vmem:[%s1575_s13 + $0x60] sm:$0xff]  ;;  %v457_v16 = vld [vmem:[%s1575_s13 + $0x68] sm:$0xff]  ;;  %v458_v18 = vld [vmem:[%s1575_s13 + $0x70] sm:$0xff]  ;;  %p1086_p6 = scmp.ne.s32.totalorder %s1633_s4, %s1085_s12  ;;  %p1775_p7 = scmp.ne.s32.totalorder %s1758_s11, 0 }
 0x1b6   : > { %v841_v17 = vpack.c.bf16 %v457_v16, %v456_v15  ;;  %v459_v19 = vld [vmem:[%s1575_s13 + $0x78] sm:$0xff] }
 0x1b7   : > { %v844_v20 = vpack.c.bf16 %v459_v19, %v458_v18  ;;  %v443_v21 = vld [vmem:[#allocation2] sm:$0xff]  ;;  %p1087_p9 = pnand %p1086_p6, %p1775_p7 }
 0x1b8   : > { %827 = vmatpush3.bf16.msra.mxu0 %v826_v2  ;;  %s697_s20 = sshll.u32 %s1771_s15, 1  ;;  %v695_v22 = vld [vmem:[%s320_s9] ss:$0 sm:$0xff]  ;;  %s1249_s9 = smov [#allocation9]  }
 0x1b9   : > { %828 = vmatprep.subr.bf16.mxu0 %v1246_v62  ;;  %s550_s26 = sadd.s32 %s1772_s30, %s697_s20  ;;  %p1088_p0 = pneg %p1087_p9 }
 0x1ba   : > { %s698_s0 = sshll.u32 %s550_s26, 7  ;;  %s1089_s27 = sshll.u32 %s1249_s9, 4  ;;  %s1090_s27 = int_to_ptr.vmem [resolvable:$false] %s1089_s27 }
 0x1bb   : > { %s1631_s16 = scalar_lea.hbm %s1774_s5, %s698_s0  ;;  %s1091_s14 = scalar_lea.vmem %s1090_s27, 256 }
 0x1bc   : > { %830 = vmatpush3.bf16.msra.mxu0 %v829_v5  ;;  %p1092_p11 = scmp.lt.s32.totalorder %s1633_s4, %s1090_s27  ;;  %p1093_p8 = scmp.lt.s32.totalorder %s1091_s14, %s1085_s12 }
 0x1bd   : > { %831 = vmatprep.subr.bf16.mxu0 %v1246_v62 }
 0x1be   : > { %p1094_p3 = por %p1093_p8, %p1092_p11 }
 0x1c0   : > { %833 = vmatpush3.bf16.msra.mxu0 %v832_v8  ;;  %p1095_p10 = pnand %p1094_p3, %p1088_p0 }
 0x1c1   : > { %834 = vmatprep.subr.bf16.mxu0 %v1246_v62 }
 0x1c4   : > { %836 = vmatpush3.bf16.msra.mxu0 %v835_v11 }
 0x1c5   : > { %837 = vmatprep.subr.bf16.mxu0 %v1246_v62 }
 0x1c8   : > { %839 = vmatpush3.bf16.msra.mxu0 %v838_v14 }
 0x1c9   : > { %840 = vmatprep.subr.bf16.mxu0 %v1246_v62 }
 0x1cc   : > { %842 = vmatpush3.bf16.msra.mxu0 %v841_v17 }
 0x1cd   : > { %843 = vmatprep.subr.bf16.mxu0 %v1246_v62 }
 0x1d0   : > { %845 = vmatpush3.bf16.msra.mxu0 %v844_v20 }
 0x1d3   : > { %788 = vmatmul.mubr.f32.vlgmr.msra.gmra.mrb[0].mxu0 %v443_v21 }
 0x2a6   : > { %v533_v23 = vpop.f32.mrb[0].mxu0 }
 0x2a7   : > { %v534_v24 = vadd.f32 %v695_v22, %v533_v23  ;;  %v789_v25 = vpop.f32.mrb[1].mxu0 }
 0x2a9   : > { %537 = vst [vmem:[%s317_s8] sm:$0xff] %v534_v24 }
 0x2aa   : > { %1098 = shalt.err (!%p1095_p10)
}
 0x2ab   : > { %s1099_s21 = scalar_lea.hbm %s1631_s16, 128  ;;  %s1103_s7 = scalar_lea.hbm %s1774_s5, 512 }
 0x2ac   : > { %p1100_p12 = scmp.ne.s32.totalorder %s1631_s16, %s1099_s21  ;;  %p1104_p13 = scmp.lt.u32.totalorder %s1631_s16, %s1774_s5 }
 0x2ad   : > { %p1105_p1 = scmp.lt.u32.totalorder %s1103_s7, %s1099_s21  ;;  %p1107_p6 = scmp.lt.u32.totalorder %s1099_s21, %s1631_s16 }
 0x2ae   : > { %p1101_p4 = pnand %p1100_p12, %p1775_p7 }
 0x2af   : > { %p1106_p5 = por %p1105_p1, %p1104_p13 }
 0x2b0   : > { %p1102_p2 = pneg %p1101_p4 }
 0x2b1   : > { %p1108_p9 = por %p1107_p6, %p1106_p5 }
 0x2b3   : > { %p1109_p0 = pnand %p1108_p9, %p1102_p2 }
 0x2b5   : > { %1112 = shalt.err (!%p1109_p0)
}
 0x2b6   : > { %854 = dma.vmem_to_hbm [thread:$0]  (%p1775_p7), %s1633_s4, 128, %s1631_s16, %s539_s23  }
 0x2b7 PF: > { %p874_p11 = scmp.ge.s32.totalorder %s1239_s6, 2  ;;  %s566_s20 = sand.u32 1, %s1187_s18  }
 0x2b8   : > { %p1776_p8 = scmp.ne.s32.totalorder %s1759_s24, 0  ;;  %s567_s26 = scalar_lea.sflag [#allocation5], %s566_s20 }
 0x2ba   : > { %p868_p3 = pnand %p874_p11, %p1776_p8 }
 0x2bc   : > { %1182 = dma.done.wait (!%p868_p3), %s567_s26, 128  }
 0x2bd   : > { %1184 = vsyncadd (!%p868_p3), %s567_s26, 4294967168  ;;  %s22_s6 = sadd.s32 1, %s1239_s6   ;;  %s1778_s11 = sld [smem:[#allocation14_spill]] }
 0x2be   : > { %p1665_p10 = scmp.ge.s32.totalorder %s22_s6, 6   ;;  %s1779_s20 = sld [smem:[#allocation25_spill]] }
 0x2bf   : > { %s1780_s17 = sld [smem:[#allocation15_spill]]  ;;  %s1781_s23 = sld [smem:[#allocation23_spill]] }
 0x2c0   : > { %s1782_s2 = sld [smem:[#allocation16_spill]]  ;;  %s1783_s26 = sld [smem:[#allocation24_spill]] }
 0x2c1   : > { %s1784_s27 = sld [smem:[#allocation19_spill]]  ;;  %s1785_s28 = sld [smem:[#allocation20_spill]] }
 0x2c2   : > { %s1786_s0 = sld [smem:[#allocation21_spill]]  ;;  %s1787_s30 = sld [smem:[#allocation22_spill]] }
 0x2c3   : > { %s1789_s18 = smov %s1191_s19  ;;  %s1790_s19 = smov %s1778_s11 }
 0x2c4   : > { %s1791_s21 = smov %s1203_s22  ;;  %s1793_s24 = smov %s1215_s25 }
 0x2c5   : > { %s1792_s22 = smov %s1780_s17  ;;  %21 = sbr.rel (!%p1665_p10) target bundleno = 16 (0x10), region = 107 }
 0x2c6   : > { %s1794_s25 = smov %s1782_s2 }
 0x2c8   : > { %s1795_s29 = smov %s1786_s0 }
 0x2cc   :  { %572 = vsyncpa [#allocation4], 1 }
 0x2cd   :  { %574 = vsyncpa [#allocation4 + $0x1], 1 }
 0x2ce   :  { %575 = vsyncpa [#allocation7], 1 }
 0x2cf   :  { %576 = vsyncpa [#allocation5], 1 }
 0x2d0   :  { %578 = vsyncpa [#allocation5 + $0x1], 1 }

</bundles_post_ra>
